<compile_context>
chip_gen: v5e
topology: v5e:2x2
jax: 0.10.0
libtpu: 0.0.40
codegen_flags: <defaults>
</compile_context>

<pallas_src>
import functools

import numpy as np
import jax
import jax.numpy as jnp
from jax.experimental import pallas as pl
from jax.experimental.pallas import tpu as pltpu


def _fused_lstm_kernel(x_ref, h_prev_ref, c_prev_ref, w_ref, b_ref,
                       h_out_ref, c_out_ref, *, num_layers, hidden, pad_in):
    """All LSTM layers for one time-step, fully resident in VMEM.

    x_ref:      (B, In)
    h_prev_ref: (L, B, H)      c_prev_ref: (L, B, H)
    w_ref:      (L, P, 4H)     P = pad_in + H, rows = [W_ih^T (padded); W_hh^T]
    b_ref:      (L, 1, 4H)     columns reordered to [i, f, o, g]
    h_out_ref:  (L, B, H)      c_out_ref:  (L, B, H)
    """
    H = hidden
    B = x_ref.shape[0]
    layer_in = x_ref[...]                       # (B, In)
    for layer in range(num_layers):             # tiny static loop (unrolled)
        pad = pad_in - layer_in.shape[1]
        pieces = [layer_in]
        if pad > 0:                             # zero-pad up to the stacked K width
            pieces.append(jnp.zeros((B, pad), jnp.float32))
        pieces.append(h_prev_ref[layer])        # (B, H)
        xh = jnp.concatenate(pieces, axis=1)    # (B, P) — single fused matmul input

        gates = (jnp.dot(xh, w_ref[layer], preferred_element_type=jnp.float32)
                 + b_ref[layer])                # (B, 4H), order [i, f, o, g]

        sig = jax.nn.sigmoid(gates[:, : 3 * H])   # one contiguous 3H-lane slice
        g = jnp.tanh(gates[:, 3 * H:])            # one H-lane slice
        i = sig[:, :H]
        f = sig[:, H: 2 * H]
        o = sig[:, 2 * H: 3 * H]

        c_new = f * c_prev_ref[layer] + i * g
        h_new = o * jnp.tanh(c_new)

        h_out_ref[layer] = h_new.astype(h_out_ref.dtype)
        c_out_ref[layer] = c_new.astype(c_out_ref.dtype)
        layer_in = h_new


def fused_lstm_forward(x, h_prev, c_prev, w_stack, b_stack):
    """x: (B, In); h_prev/c_prev: (L, B, H); w_stack: (L, P, 4H); b_stack: (L, 1, 4H)."""
    L, B, H = h_prev.shape
    P = w_stack.shape[1]
    kernel = functools.partial(_fused_lstm_kernel,
                               num_layers=L, hidden=H, pad_in=P - H)

    full = lambda shape: pl.BlockSpec(shape, lambda: (0,) * len(shape))

    # Advisory cost estimate + VMEM budget (with generous headroom, clamped
    # well below the v7x 64 MiB / default 32 MiB scoped limits).
    arrs = (x, h_prev, c_prev, w_stack, b_stack)
    in_bytes = sum(int(a.size) * a.dtype.itemsize for a in arrs)
    out_bytes = 2 * L * B * H * 4
    total_bytes = in_bytes + out_bytes
    flops = 2 * L * B * P * 4 * H
    transcendentals = L * B * 5 * H  # 3H sigmoid + H tanh(gate) + H tanh(c)

    h_new, c_new = pl.pallas_call(
        kernel,
        grid=(),  # single invocation; every array is one full VMEM block
        in_specs=[
            full(x.shape),
            full(h_prev.shape),
            full(c_prev.shape),
            full(w_stack.shape),
            full(b_stack.shape),
        ],
        out_specs=(full((L, B, H)), full((L, B, H))),
        out_shape=(
            jax.ShapeDtypeStruct((L, B, H), jnp.float32),
            jax.ShapeDtypeStruct((L, B, H), jnp.float32),
        ),
        input_output_aliases={1: 0, 2: 1},  # update h/c state in place
        compiler_params=pltpu.CompilerParams(
            vmem_limit_bytes=int(min(max(4 * total_bytes, 4 << 20), 32 << 20))),
        cost_estimate=pl.CostEstimate(flops=flops,
                                      transcendentals=transcendentals,
                                      bytes_accessed=total_bytes),
    )(x, h_prev, c_prev, w_stack, b_stack)
    return h_new, c_new


class Controller:
    """JAX/Pallas port of the PyTorch NTM LSTM controller."""

    def __init__(self, num_inputs: int, num_outputs: int, num_layers: int, key):
        self.num_inputs = num_inputs
        self.num_outputs = num_outputs
        self.num_layers = num_layers

        H = num_outputs
        self.pad_in = max(num_inputs, H)           # common K-padding across layers
        stdev = 5.0 / np.sqrt(num_inputs + num_outputs)

        # Column permutation: PyTorch gate order [i, f, g, o] -> kernel [i, f, o, g].
        perm = np.concatenate([np.arange(0, H), np.arange(H, 2 * H),
                               np.arange(3 * H, 4 * H), np.arange(2 * H, 3 * H)])

        keys = jax.random.split(key, 2 * num_layers + 2)

        # Original-order per-layer params (kept for the pure-JAX reference).
        self.w_ih_t, self.w_hh_t, self.bias = [], [], []
        w_layers, b_layers = [], []
        for layer in range(num_layers):
            in_size = num_inputs if layer == 0 else H
            w_ih = jax.random.uniform(keys[2 * layer], (4 * H, in_size),
                                      minval=-stdev, maxval=stdev, dtype=jnp.float32)
            w_hh = jax.random.uniform(keys[2 * layer + 1], (4 * H, H),
                                      minval=-stdev, maxval=stdev, dtype=jnp.float32)
            b = jnp.zeros((4 * H,), jnp.float32)   # b_ih + b_hh (both zero-init)

            w_ih_t, w_hh_t = w_ih.T, w_hh.T        # (in_size, 4H), (H, 4H)
            self.w_ih_t.append(w_ih_t)
            self.w_hh_t.append(w_hh_t)
            self.bias.append(b.reshape(1, 4 * H))

            top = w_ih_t
            if in_size < self.pad_in:              # zero-pad K rows to common width
                top = jnp.concatenate(
                    [top, jnp.zeros((self.pad_in - in_size, 4 * H), jnp.float32)], axis=0)
            w_full = jnp.concatenate([top, w_hh_t], axis=0)   # (P, 4H), order [i,f,g,o]
            w_layers.append(w_full[:, perm])                  # reorder to [i,f,o,g]
            b_layers.append(b[perm].reshape(1, 4 * H))

        self.w_stack = jnp.stack(w_layers, axis=0)   # (L, P, 4H)
        self.b_stack = jnp.stack(b_layers, axis=0)   # (L, 1, 4H)

        self.lstm_h_bias = 0.05 * jax.random.normal(keys[-2], (num_layers, 1, H), jnp.float32)
        self.lstm_c_bias = 0.05 * jax.random.normal(keys[-1], (num_layers, 1, H), jnp.float32)

    @property
    def size(self):
        return (self.num_inputs, self.num_outputs)

    def create_new_state(self, batch_size: int):
        lstm_h = jnp.tile(self.lstm_h_bias, (1, batch_size, 1))
        lstm_c = jnp.tile(self.lstm_c_bias, (1, batch_size, 1))
        return (lstm_h, lstm_c)

    def forward(self, x, prev_state):
        # PyTorch: x.unsqueeze(0) -> (1, B, In); single time-step LSTM; squeeze(0).
        h_prev, c_prev = prev_state                       # each (L, B, H)
        h_new, c_new = fused_lstm_forward(x, h_prev, c_prev,
                                          self.w_stack, self.b_stack)
        outp = h_new[-1]                                  # (B, H)
        return outp, (h_new, c_new)


def _reference_forward(ctrl: Controller, x, prev_state):
    """Pure-JAX reference (original PyTorch gate order, un-fused weights)."""
    h_prev, c_prev = prev_state
    H = ctrl.num_outputs
    layer_in = x
    h_new, c_new = [], []
    for layer in range(ctrl.num_layers):
        gates = (layer_in @ ctrl.w_ih_t[layer]
                 + h_prev[layer] @ ctrl.w_hh_t[layer]
                 + ctrl.bias[layer])
        i = jax.nn.sigmoid(gates[:, 0 * H:1 * H])
        f = jax.nn.sigmoid(gates[:, 1 * H:2 * H])
        g = jnp.tanh(gates[:, 2 * H:3 * H])
        o = jax.nn.sigmoid(gates[:, 3 * H:4 * H])
        c_l = f * c_prev[layer] + i * g
        h_l = o * jnp.tanh(c_l)
        h_new.append(h_l)
        c_new.append(c_l)
        layer_in = h_l
    return layer_in, (jnp.stack(h_new, 0), jnp.stack(c_new, 0))


if __name__ == "__main__":
    key = jax.random.PRNGKey(0)
    configs = [
        dict(batch=8, num_inputs=32, num_outputs=32, num_layers=2),
        dict(batch=8, num_inputs=64, num_outputs=32, num_layers=3),  # exercises K-padding
    ]
    for idx, cfg in enumerate(configs):
        k_params, k_x = jax.random.split(jax.random.fold_in(key, idx))
        ctrl = Controller(cfg["num_inputs"], cfg["num_outputs"], cfg["num_layers"], k_params)
        x = jax.random.normal(k_x, (cfg["batch"], cfg["num_inputs"]), dtype=jnp.float32)
        prev_state = ctrl.create_new_state(cfg["batch"])

        # Compute the pure-JAX reference first (the Pallas call aliases the state buffers).
        ref_out, (ref_h, ref_c) = _reference_forward(ctrl, x, prev_state)

        outp, (h_new, c_new) = ctrl.forward(x, prev_state)
        jax.block_until_ready((outp, h_new, c_new))

        assert np.allclose(np.asarray(outp), np.asarray(ref_out), atol=1e-5)
        assert np.allclose(np.asarray(h_new), np.asarray(ref_h), atol=1e-5)
        assert np.allclose(np.asarray(c_new), np.asarray(ref_c), atol=1e-5)

    print("KERNEL_OK")
</pallas_src>

<mosaic_0001>
module attributes {stable_mosaic.version = 11 : i64} {
  func.func @_fused_lstm_kernel(%arg0: memref<8x32xf32, #tpu.memory_space<vmem>>, %arg1: memref<2x8x32xf32, #tpu.memory_space<vmem>>, %arg2: memref<2x8x32xf32, #tpu.memory_space<vmem>>, %arg3: memref<2x64x128xf32, #tpu.memory_space<vmem>>, %arg4: memref<2x1x128xf32, #tpu.memory_space<vmem>>, %arg5: memref<2x8x32xf32, #tpu.memory_space<vmem>>, %arg6: memref<2x8x32xf32, #tpu.memory_space<vmem>>) attributes {dimension_semantics = [], scalar_prefetch = 0 : i64, scratch_operands = 0 : i64, tpu.core_type = #tpu.core_type<tc>} {
    %c0 = arith.constant 0 : index
    %c0_0 = arith.constant 0 : index
    %0 = vector.load %arg0[%c0, %c0_0] : memref<8x32xf32, #tpu.memory_space<vmem>>, vector<8x32xf32>
    %c0_1 = arith.constant 0 : index
    %c0_2 = arith.constant 0 : index
    %c0_3 = arith.constant 0 : index
    %1 = vector.load %arg1[%c0_1, %c0_2, %c0_3] : memref<2x8x32xf32, #tpu.memory_space<vmem>>, vector<1x8x32xf32>
    %2 = vector.shape_cast %1 : vector<1x8x32xf32> to vector<8x32xf32>
    %3 = tpu.concatenate %0, %2 in 1 : vector<8x32xf32>, vector<8x32xf32> -> vector<8x64xf32>
    %c0_4 = arith.constant 0 : index
    %c0_5 = arith.constant 0 : index
    %c0_6 = arith.constant 0 : index
    %4 = vector.load %arg3[%c0_4, %c0_5, %c0_6] : memref<2x64x128xf32, #tpu.memory_space<vmem>>, vector<1x64x128xf32>
    %5 = vector.shape_cast %4 : vector<1x64x128xf32> to vector<64x128xf32>
    %cst = arith.constant dense<0.000000e+00> : vector<8x128xf32>
    %6 = tpu.matmul %3, %5, %cst {dimension_numbers = #tpu.dot_dimension_numbers<[1], [0], [0], [1], [0, 0, 1, 1], [], []>} : vector<8x64xf32>, vector<64x128xf32>, vector<8x128xf32> -> vector<8x128xf32>
    %c0_7 = arith.constant 0 : index
    %c0_8 = arith.constant 0 : index
    %c0_9 = arith.constant 0 : index
    %7 = vector.load %arg4[%c0_7, %c0_8, %c0_9] : memref<2x1x128xf32, #tpu.memory_space<vmem>>, vector<1x1x128xf32>
    %8 = vector.shape_cast %7 : vector<1x1x128xf32> to vector<1x128xf32>
    %9 = vector.broadcast %8 : vector<1x128xf32> to vector<8x128xf32>
    %10 = arith.addf %6, %9 : vector<8x128xf32>
    %11 = vector.extract_strided_slice %10 {offsets = [0, 0], sizes = [8, 96], strides = [1, 1]} : vector<8x128xf32> to vector<8x96xf32>
    %12 = arith.negf %11 : vector<8x96xf32>
    %13 = math.exp %12 : vector<8x96xf32>
    %cst_10 = arith.constant 1.000000e+00 : f32
    %14 = vector.broadcast %cst_10 : f32 to vector<8x96xf32>
    %15 = arith.addf %14, %13 : vector<8x96xf32>
    %16 = arith.divf %14, %15 : vector<8x96xf32>
    %17 = vector.extract_strided_slice %10 {offsets = [0, 96], sizes = [8, 32], strides = [1, 1]} : vector<8x128xf32> to vector<8x32xf32>
    %18 = math.tanh %17 : vector<8x32xf32>
    %19 = vector.extract_strided_slice %16 {offsets = [0, 0], sizes = [8, 32], strides = [1, 1]} : vector<8x96xf32> to vector<8x32xf32>
    %20 = vector.extract_strided_slice %16 {offsets = [0, 32], sizes = [8, 32], strides = [1, 1]} : vector<8x96xf32> to vector<8x32xf32>
    %21 = vector.extract_strided_slice %16 {offsets = [0, 64], sizes = [8, 32], strides = [1, 1]} : vector<8x96xf32> to vector<8x32xf32>
    %c0_11 = arith.constant 0 : index
    %c0_12 = arith.constant 0 : index
    %c0_13 = arith.constant 0 : index
    %22 = vector.load %arg2[%c0_11, %c0_12, %c0_13] : memref<2x8x32xf32, #tpu.memory_space<vmem>>, vector<1x8x32xf32>
    %23 = vector.shape_cast %22 : vector<1x8x32xf32> to vector<8x32xf32>
    %24 = arith.mulf %20, %23 : vector<8x32xf32>
    %25 = arith.mulf %19, %18 : vector<8x32xf32>
    %26 = arith.addf %24, %25 : vector<8x32xf32>
    %27 = math.tanh %26 : vector<8x32xf32>
    %28 = arith.mulf %21, %27 : vector<8x32xf32>
    %c0_14 = arith.constant 0 : index
    %c0_15 = arith.constant 0 : index
    %c0_16 = arith.constant 0 : index
    %29 = vector.load %arg5[%c0_14, %c0_15, %c0_16] : memref<2x8x32xf32, #tpu.memory_space<vmem>>, vector<1x8x32xf32>
    %30 = vector.shape_cast %29 : vector<1x8x32xf32> to vector<8x32xf32>
    %31 = vector.shape_cast %28 : vector<8x32xf32> to vector<1x8x32xf32>
    tpu.vector_store %arg5[%c0_14, %c0_15, %c0_16], %31 {strides = array<i32>} : memref<2x8x32xf32, #tpu.memory_space<vmem>>, vector<1x8x32xf32>,
    %c0_17 = arith.constant 0 : index
    %c0_18 = arith.constant 0 : index
    %c0_19 = arith.constant 0 : index
    %32 = vector.load %arg6[%c0_17, %c0_18, %c0_19] : memref<2x8x32xf32, #tpu.memory_space<vmem>>, vector<1x8x32xf32>
    %33 = vector.shape_cast %32 : vector<1x8x32xf32> to vector<8x32xf32>
    %34 = vector.shape_cast %26 : vector<8x32xf32> to vector<1x8x32xf32>
    tpu.vector_store %arg6[%c0_17, %c0_18, %c0_19], %34 {strides = array<i32>} : memref<2x8x32xf32, #tpu.memory_space<vmem>>, vector<1x8x32xf32>,
    %c1 = arith.constant 1 : index
    %c0_20 = arith.constant 0 : index
    %c0_21 = arith.constant 0 : index
    %35 = vector.load %arg1[%c1, %c0_20, %c0_21] : memref<2x8x32xf32, #tpu.memory_space<vmem>>, vector<1x8x32xf32>
    %36 = vector.shape_cast %35 : vector<1x8x32xf32> to vector<8x32xf32>
    %37 = tpu.concatenate %28, %36 in 1 : vector<8x32xf32>, vector<8x32xf32> -> vector<8x64xf32>
    %c1_22 = arith.constant 1 : index
    %c0_23 = arith.constant 0 : index
    %c0_24 = arith.constant 0 : index
    %38 = vector.load %arg3[%c1_22, %c0_23, %c0_24] : memref<2x64x128xf32, #tpu.memory_space<vmem>>, vector<1x64x128xf32>
    %39 = vector.shape_cast %38 : vector<1x64x128xf32> to vector<64x128xf32>
    %cst_25 = arith.constant dense<0.000000e+00> : vector<8x128xf32>
    %40 = tpu.matmul %37, %39, %cst_25 {dimension_numbers = #tpu.dot_dimension_numbers<[1], [0], [0], [1], [0, 0, 1, 1], [], []>} : vector<8x64xf32>, vector<64x128xf32>, vector<8x128xf32> -> vector<8x128xf32>
    %c1_26 = arith.constant 1 : index
    %c0_27 = arith.constant 0 : index
    %c0_28 = arith.constant 0 : index
    %41 = vector.load %arg4[%c1_26, %c0_27, %c0_28] : memref<2x1x128xf32, #tpu.memory_space<vmem>>, vector<1x1x128xf32>
    %42 = vector.shape_cast %41 : vector<1x1x128xf32> to vector<1x128xf32>
    %43 = vector.broadcast %42 : vector<1x128xf32> to vector<8x128xf32>
    %44 = arith.addf %40, %43 : vector<8x128xf32>
    %45 = vector.extract_strided_slice %44 {offsets = [0, 0], sizes = [8, 96], strides = [1, 1]} : vector<8x128xf32> to vector<8x96xf32>
    %46 = arith.negf %45 : vector<8x96xf32>
    %47 = math.exp %46 : vector<8x96xf32>
    %cst_29 = arith.constant 1.000000e+00 : f32
    %48 = vector.broadcast %cst_29 : f32 to vector<8x96xf32>
    %49 = arith.addf %48, %47 : vector<8x96xf32>
    %50 = arith.divf %48, %49 : vector<8x96xf32>
    %51 = vector.extract_strided_slice %44 {offsets = [0, 96], sizes = [8, 32], strides = [1, 1]} : vector<8x128xf32> to vector<8x32xf32>
    %52 = math.tanh %51 : vector<8x32xf32>
    %53 = vector.extract_strided_slice %50 {offsets = [0, 0], sizes = [8, 32], strides = [1, 1]} : vector<8x96xf32> to vector<8x32xf32>
    %54 = vector.extract_strided_slice %50 {offsets = [0, 32], sizes = [8, 32], strides = [1, 1]} : vector<8x96xf32> to vector<8x32xf32>
    %55 = vector.extract_strided_slice %50 {offsets = [0, 64], sizes = [8, 32], strides = [1, 1]} : vector<8x96xf32> to vector<8x32xf32>
    %c1_30 = arith.constant 1 : index
    %c0_31 = arith.constant 0 : index
    %c0_32 = arith.constant 0 : index
    %56 = vector.load %arg2[%c1_30, %c0_31, %c0_32] : memref<2x8x32xf32, #tpu.memory_space<vmem>>, vector<1x8x32xf32>
    %57 = vector.shape_cast %56 : vector<1x8x32xf32> to vector<8x32xf32>
    %58 = arith.mulf %54, %57 : vector<8x32xf32>
    %59 = arith.mulf %53, %52 : vector<8x32xf32>
    %60 = arith.addf %58, %59 : vector<8x32xf32>
    %61 = math.tanh %60 : vector<8x32xf32>
    %62 = arith.mulf %55, %61 : vector<8x32xf32>
    %c1_33 = arith.constant 1 : index
    %c0_34 = arith.constant 0 : index
    %c0_35 = arith.constant 0 : index
    %63 = vector.load %arg5[%c1_33, %c0_34, %c0_35] : memref<2x8x32xf32, #tpu.memory_space<vmem>>, vector<1x8x32xf32>
    %64 = vector.shape_cast %63 : vector<1x8x32xf32> to vector<8x32xf32>
    %65 = vector.shape_cast %62 : vector<8x32xf32> to vector<1x8x32xf32>
    tpu.vector_store %arg5[%c1_33, %c0_34, %c0_35], %65 {strides = array<i32>} : memref<2x8x32xf32, #tpu.memory_space<vmem>>, vector<1x8x32xf32>,
    %c1_36 = arith.constant 1 : index
    %c0_37 = arith.constant 0 : index
    %c0_38 = arith.constant 0 : index
    %66 = vector.load %arg6[%c1_36, %c0_37, %c0_38] : memref<2x8x32xf32, #tpu.memory_space<vmem>>, vector<1x8x32xf32>
    %67 = vector.shape_cast %66 : vector<1x8x32xf32> to vector<8x32xf32>
    %68 = vector.shape_cast %60 : vector<8x32xf32> to vector<1x8x32xf32>
    tpu.vector_store %arg6[%c1_36, %c0_37, %c0_38], %68 {strides = array<i32>} : memref<2x8x32xf32, #tpu.memory_space<vmem>>, vector<1x8x32xf32>,
    return
  }
}

</mosaic_0001>

<bundles_post_ra>
// kernel: tpu_custom_call.1
= control target key start
LH: loop header
LB: loop body
LE: loop exit
PB: predicated region body
PF: predicated region fallthrough
CT: control target
= control target key end

     0   :  { %12 = vsyncpa [#allocation3], 0  ;;  %s571_s0 = inlined_call_operand.vmem [shape: f32[8,32], index: 0, kind: input, shape index: {}]   ;;  %s572_s1 = inlined_call_operand.hbm [shape: f32[2,8,32], index: 1, kind: input, shape index: {}, may-alias: {1,5}]   ;;  %s573_s2 = inlined_call_operand.hbm [shape: f32[2,8,32], index: 2, kind: input, shape index: {}, may-alias: {2,6}]   ;;  %s574_s3 = inlined_call_operand.hbm [shape: f32[2,64,128], index: 3, kind: input, shape index: {}]   ;;  %s575_s4 = inlined_call_operand.vmem [shape: f32[2,1,128], index: 4, kind: input, shape index: {}]   ;;  %s576_s5 = inlined_call_operand.hbm [shape: f32[2,8,32], index: 5, kind: output, shape index: {0}, may-alias: {1,5}]   ;;  %s577_s6 = inlined_call_operand.hbm [shape: f32[2,8,32], index: 6, kind: output, shape index: {1}, may-alias: {2,6}]  }
   0x1   :  { %13 = vsyncpa [#allocation6], 0 }
   0x2   :  { %14 = vsyncpa [#allocation4], 0 }
   0x3   :  { %15 = vsyncpa [#allocation10], 0  ;;  %s35_s23 = sshll.u32 %s573_s2, 4  ;;  %s465_s24 = smov [#allocation5]   ;;  %s36_s23 = int_to_ptr.hbm [resolvable:$true] %s35_s23 }
   0x4   :  { %s37_s25 = sshll.u32 %s465_s24, 4  ;;  %s22_s28 = sshll.u32 %s572_s1, 4  ;;  %s38_s25 = int_to_ptr.vmem [resolvable:$true] %s37_s25  ;;  %s23_s28 = int_to_ptr.hbm [resolvable:$true] %s22_s28 }
   0x5   :  { %s466_s29 = smov 128   ;;  %s467_s30 = smov 8  }
   0x6   :  { %43 = dma.hbm_to_vmem [thread:$0]  %s36_s23, 256, %s38_s25, [#allocation6], %s466_s29, %s466_s29, %s467_s30  }
   0x7   :  { %s468_s7 = smov [#allocation2]   ;;  %s48_s2 = sshll.u32 %s574_s3, 4  ;;  %s49_s2 = int_to_ptr.hbm [resolvable:$true] %s48_s2 }
   0x8   :  { %s24_s8 = sshll.u32 %s468_s7, 4  ;;  %s469_s1 = smov [#allocation7]   ;;  %s25_s8 = int_to_ptr.vmem [resolvable:$true] %s24_s8 }
   0x9   :  { %30 = dma.hbm_to_vmem [thread:$0]  %s23_s28, 256, %s25_s8, [#allocation3], %s466_s29, %s466_s29, %s467_s30  }
   0xa   :  { %s50_s11 = sshll.u32 %s469_s1, 4  ;;  %s51_s11 = int_to_ptr.vmem [resolvable:$true] %s50_s11 }
   0xb   :  { %56 = dma.hbm_to_vmem [thread:$0]  %s49_s2, 2048, %s51_s11, [#allocation6], %s466_s29, %s466_s29, %s467_s30  }
   0xc   :  { %457 = dma.done.wait [#allocation3], 256  }
   0xd   :  { %458 = vsyncadd [#allocation3], 4294967040 }
   0xe   :  { %459 = dma.done.wait [#allocation6], 2304  }
   0xf   :  { %460 = vsyncadd [#allocation6], 4294964992  ;;  %v72_v0 = vld [vmem:[#allocation2] sm:$0xff]  ;;  %v86_v1 = vld [vmem:[#allocation7 + $0x38] sm:$0xff]  ;;  %s470_s3 = smov 32   ;;  %vm77_vm0 = vcmask 261120  }
  0x10   :  { %v85_v2 = vld [vmem:[#allocation7 + $0x30] sm:$0xff]  ;;  %74 = vrot.lane.b32.xlu0 %v72_v0, %s470_s3  ;;  %103 = vmatpush.msra.mxu0 %v86_v1  ;;  %v84_v3 = vld [vmem:[#allocation7 + $0x28] sm:$0xff]  ;;  %v83_v4 = vld [vmem:[#allocation7 + $0x20] sm:$0xff]  ;;  %vm91_vm1 = vcmask 523264   ;;  %s472_s16 = smov 96   ;;  %s285_s22 = sshll.u32 %s577_s6, 4  ;;  %s286_s22 = int_to_ptr.hbm [resolvable:$true] %s285_s22 }
  0x11   :  { %v82_v5 = vld [vmem:[#allocation7 + $0x18] sm:$0xff]  ;;  %v81_v6 = vld [vmem:[#allocation7 + $0x10] sm:$0xff]  ;;  %v80_v7 = vld [vmem:[#allocation7 + $0x8] sm:$0xff]  ;;  %s474_s23 = smov [#allocation8]   ;;  %s272_s27 = sshll.u32 %s576_s5, 4  ;;  %s273_s27 = int_to_ptr.hbm [resolvable:$true] %s272_s27 }
  0x12   :  { %104 = vmatpush.msra.mxu0 %v85_v2  ;;  %v79_v8 = vld [vmem:[#allocation7] sm:$0xff]  ;;  %v135_v9 = vld [vmem:[#allocation5] sm:$0xff]  ;;  %v168_v32 = vld [vmem:[#allocation2 + $0x8] sm:$0xff]  ;;  %s270_s24 = sshll.u32 %s474_s23, 4  ;;  %s271_s24 = int_to_ptr.vmem [resolvable:$true] %s270_s24 }
  0x13   :  { %137 = vrot.lane.b32.xlu1 %v135_v9, %s470_s3  ;;  %v71_v10 = vld [vmem:[%s571_s0] sm:$0xff]  ;;  %v182_v38 = vld [vmem:[#allocation7 + $0x78] sm:$0xff]  ;;  %v181_v39 = vld [vmem:[#allocation7 + $0x70] sm:$0xff]  ;;  %s471_s0 = smov 64  }
  0x14   :  { %105 = vmatpush.msra.mxu0 %v84_v3  ;;  %v319_v13 = vld [vmem:[%s575_s4] ss:$0 sm:$0xff]  ;;  %199 = vmatpush.msra.mxu1 %v182_v38  ;;  %v180_v40 = vld [vmem:[#allocation7 + $0x68] sm:$0xff]  ;;  %v178_v42 = vld [vmem:[#allocation7 + $0x58] sm:$0xff] }
  0x15   :  { %v179_v41 = vld [vmem:[#allocation7 + $0x60] sm:$0xff]  ;;  %v177_v43 = vld [vmem:[#allocation7 + $0x50] sm:$0xff]  ;;  %v176_v44 = vld [vmem:[#allocation7 + $0x48] sm:$0xff] }
  0x16   :  { %106 = vmatpush.msra.mxu0 %v83_v4  ;;  %200 = vmatpush.msra.mxu1 %v181_v39  ;;  %v232_v47 = vld [vmem:[#allocation5 + $0x8] sm:$0xff]  ;;  %v175_v48 = vld [vmem:[#allocation7 + $0x40] sm:$0xff] }
  0x17   :  { %v320_v54 = vld [vmem:[%s575_s4 + $0x1] ss:$0 sm:$0xff]  ;;  %s473_s4 = smov [#allocation9]  }
  0x18   :  { %107 = vmatpush.msra.mxu0 %v82_v5  ;;  %201 = vmatpush.msra.mxu1 %v180_v40  ;;  %s283_s19 = sshll.u32 %s473_s4, 4  ;;  %s284_s19 = int_to_ptr.vmem [resolvable:$true] %s283_s19 }
  0x1a   :  { %108 = vmatpush.msra.mxu0 %v81_v6  ;;  %202 = vmatpush.msra.mxu1 %v179_v41 }
  0x1c   :  { %109 = vmatpush.msra.mxu0 %v80_v7  ;;  %203 = vmatpush.msra.mxu1 %v178_v42 }
  0x1e   :  { %110 = vmatpush.msra.mxu0 %v79_v8  ;;  %204 = vmatpush.msra.mxu1 %v177_v43 }
  0x20   :  { %205 = vmatpush.msra.mxu1 %v176_v44 }
  0x22   :  { %206 = vmatpush.msra.mxu1 %v175_v48 }
  0x82   :  { %v75_v11 = vpop.permute.xlu0 %74 }
  0x83   :  { %v78_v12 = vsel %vm77_vm0, %v71_v10, %v75_v11 }
  0x84   :  { %304 = vmatmul.msk.f32.vlgmr.msra.gmra.mxu0 %vm91_vm1, %v78_v12 }
  0x85   :  { %v138_v33 = vpop.permute.xlu1 %137 }
 0x101   :  { %v112_v14 = vpop.f32.mrf.mxu0 }
 0x102   :  { %v113_v15 = vadd.f32 %v319_v13, %v112_v14 }
 0x104   :  { %321 = vtanh.f32 %v113_v15  ;;  %v305_v17 = vmul.f32 -1.442695, %v113_v15 }
 0x106   :  { %323 = vpow2.f32 %v305_v17 }
 0x10a   :  { %v322_v16 = vpop.eup %321 }
 0x10b   :  { %142 = vrot.lane.b32.xlu0 %v322_v16, %s470_s3 }
 0x10c   :  { %v324_v18 = vpop.eup %323 }
 0x10d   :  { %v118_v19 = vadd.f32 1.0, %v324_v18 }
 0x10f   :  { %325 = vrcp.f32 %v118_v19  ;;  %v130_v25 = vand.u32 2147483648, %v118_v19  ;;  %vm124_vm3 = vweird.f32 %v118_v19  ;;  %v128_v26 = vand.u32 2147483647, %v118_v19 }
 0x111   :  { %v131_v28 = vor.u32 1.1754944e-38, %v130_v25  ;;  %vm129_vm5 = vcmp.eq.f32.partialorder %v128_v26, 8.507059e+37 }
 0x113   :  { %170 = vrot.lane.b32.xlu0 %v168_v32, %s470_s3 }
 0x115   :  { %v326_v20 = vpop.eup %325 }
 0x116   :  { %v120_v21 = vmul.f32 %v326_v20, %v118_v19  ;;  %vm125_vm2 = vweird.f32 %v326_v20 }
 0x117   :  { %vm126_vm4 = vmor %vm124_vm3, %vm125_vm2 }
 0x118   :  { %v121_v22 = vsub.f32 1.0, %v120_v21 }
 0x11a   :  { %v122_v23 = vmul.f32 %v326_v20, %v121_v22 }
 0x11c   :  { %v123_v24 = vadd.f32 %v326_v20, %v122_v23 }
 0x11e   :  { %v127_v27 = vsel %vm126_vm4, %v326_v20, %v123_v24 }
 0x11f   :  { %v132_v29 = vsel %vm129_vm5, %v131_v28, %v127_v27 }
 0x120   :  { %v140_v34 = vmul.f32 %v138_v33, %v132_v29 }
 0x17d   :  { %v143_v30 = vpop.permute.xlu0 %142 }
 0x17e   :  { %v145_v31 = vmul.f32 %v143_v30, %v132_v29 }
 0x180   :  { %147 = vrot.lane.b32.xlu1 %v145_v31, %s470_s3 }
 0x185   :  { %v171_v49 = vpop.permute.xlu0 %170 }
 0x1f2   :  { %v148_v35 = vpop.permute.xlu1 %147 }
 0x1f3   :  { %v150_v36 = vadd.f32 %v148_v35, %v140_v34 }
 0x1f5   :  { %327 = vtanh.f32 %v150_v36 }
 0x1fb   :  { %v328_v37 = vpop.eup %327 }
 0x1fc   :  { %153 = vrot.lane.b32.xlu2 %v328_v37, %s470_s3 }
 0x256   :  { %v154_v45 = vpop.permute.xlu2 %153 }
 0x257   :  { %v156_v46 = vmul.f32 %v154_v45, %v132_v29 }
 0x259   :  { %158 = vrot.lane.b32.xlu2 %v156_v46, %s471_s0 }
 0x261   :  { %234 = vrot.lane.b32.xlu2 %v232_v47, %s470_s3 }
 0x269   :  { %163 = vrot.lane.b32.xlu2 %v150_v36, %s472_s16 }
 0x2b3   :  { %v159_v50 = vpop.permute.xlu2 %158 }
 0x2b4   :  { %161 = vst.msk [vmem:[#allocation8] sm:$0xff] %vm77_vm0, %v159_v50  ;;  %v173_v51 = vsel %vm77_vm0, %v159_v50, %v171_v49 }
 0x2b5   :  { %307 = vmatmul.msk.f32.vlgmr.msra.gmra.mxu1 %vm91_vm1, %v173_v51 }
 0x2bb   :  { %v235_v52 = vpop.permute.xlu2 %234 }
 0x2c3   :  { %v164_v53 = vpop.permute.xlu2 %163 }
 0x2c4   :  { %166 = vst.msk [vmem:[#allocation9] sm:$0xff] %vm77_vm0, %v164_v53 }
 0x332   :  { %v208_v55 = vpop.f32.mrf.mxu1 }
 0x333   :  { %v209_v56 = vadd.f32 %v320_v54, %v208_v55 }
 0x335   :  { %329 = vtanh.f32 %v209_v56  ;;  %v308_v58 = vmul.f32 -1.442695, %v209_v56 }
 0x337   :  { %331 = vpow2.f32 %v308_v58 }
 0x33b   :  { %v330_v57 = vpop.eup %329 }
 0x33c   :  { %239 = vrot.lane.b32.xlu1 %v330_v57, %s470_s3 }
 0x33d   :  { %v332_v59 = vpop.eup %331 }
 0x33e   :  { %v214_v60 = vadd.f32 1.0, %v332_v59 }
 0x340   :  { %333 = vrcp.f32 %v214_v60  ;;  %v226_v2 = vand.u32 2147483648, %v214_v60  ;;  %vm220_vm7 = vweird.f32 %v214_v60  ;;  %v224_v3 = vand.u32 2147483647, %v214_v60 }
 0x342   :  { %v227_v5 = vor.u32 1.1754944e-38, %v226_v2  ;;  %vm225_vm9 = vcmp.eq.f32.partialorder %v224_v3, 8.507059e+37 }
 0x346   :  { %v334_v61 = vpop.eup %333 }
 0x347   :  { %v216_v62 = vmul.f32 %v334_v61, %v214_v60  ;;  %vm221_vm6 = vweird.f32 %v334_v61 }
 0x348   :  { %vm222_vm8 = vmor %vm220_vm7, %vm221_vm6 }
 0x349   :  { %v217_v63 = vsub.f32 1.0, %v216_v62 }
 0x34b   :  { %v218_v0 = vmul.f32 %v334_v61, %v217_v63 }
 0x34d   :  { %v219_v1 = vadd.f32 %v334_v61, %v218_v0 }
 0x34f   :  { %v223_v4 = vsel %vm222_vm8, %v334_v61, %v219_v1 }
 0x350   :  { %v228_v7 = vsel %vm225_vm9, %v227_v5, %v223_v4 }
 0x351   :  { %v237_v9 = vmul.f32 %v235_v52, %v228_v7 }
 0x3ae   :  { %v240_v6 = vpop.permute.xlu1 %239 }
 0x3af   :  { %v242_v8 = vmul.f32 %v240_v6, %v228_v7 }
 0x3b1   :  { %244 = vrot.lane.b32.xlu0 %v242_v8, %s470_s3 }
 0x423   :  { %v245_v10 = vpop.permute.xlu0 %244 }
 0x424   :  { %v247_v11 = vadd.f32 %v245_v10, %v237_v9 }
 0x426   :  { %335 = vtanh.f32 %v247_v11 }
 0x42c   :  { %v336_v12 = vpop.eup %335 }
 0x42d   :  { %250 = vrot.lane.b32.xlu1 %v336_v12, %s470_s3 }
 0x435   :  { %261 = vrot.lane.b32.xlu1 %v247_v11, %s472_s16 }
 0x49f   :  { %v251_v13 = vpop.permute.xlu1 %250 }
 0x4a0   :  { %v253_v14 = vmul.f32 %v251_v13, %v228_v7 }
 0x4a2   :  { %255 = vrot.lane.b32.xlu0 %v253_v14, %s471_s0 }
 0x4a7   :  { %v262_v15 = vpop.permute.xlu1 %261 }
 0x4a8   :  { %265 = vst.msk [vmem:[#allocation9 + $0x8] sm:$0xff] %vm77_vm0, %v262_v15 }
 0x4a9   :  { %291 = dma.vmem_to_hbm [thread:$0]  %s284_s19, 256, %s286_s22, [#allocation10], %s466_s29, %s466_s29, %s467_s30  }
 0x514   :  { %v256_v16 = vpop.permute.xlu0 %255 }
 0x515   :  { %259 = vst.msk [vmem:[#allocation8 + $0x8] sm:$0xff] %vm77_vm0, %v256_v16 }
 0x516   :  { %278 = dma.vmem_to_hbm [thread:$0]  %s271_s24, 256, %s273_s27, [#allocation4], %s466_s29, %s466_s29, %s467_s30  }
 0x517   :  { %461 = dma.done.wait [#allocation4], 256  }
 0x518   :  { %462 = vsyncadd [#allocation4], 4294967040 }
 0x519   :  { %463 = dma.done.wait [#allocation10], 256  }
 0x51a   :  { %464 = vsyncadd [#allocation10], 4294967040 }
 0x51b   :  { %300 = vsyncpa [#allocation3], 1 }
 0x51c   :  { %301 = vsyncpa [#allocation6], 1 }
 0x51d   :  { %302 = vsyncpa [#allocation4], 1 }
 0x51e   :  { %303 = vsyncpa [#allocation10], 1 }

</bundles_post_ra>
